<compile_context>
chip_gen: v7x
topology: tpu7x:2x2x1
jax: 0.10.0
libtpu: 0.0.40
codegen_flags: <defaults>
</compile_context>

<pallas_src>
import math
import functools

import jax
import jax.numpy as jnp
from jax.experimental import pallas as pl
from jax.experimental.pallas import tpu as pltpu

# ---------------- config (small, GPT2-like) ----------------
BATCH = 2
SEQ = 8
HIDDEN = 64
NUM_HEADS = 4
HEAD_DIM = HIDDEN // NUM_HEADS
INNER = 4 * HIDDEN
LN_EPS = 1e-5
SCALE_ATTN_WEIGHTS = True            # config.scale_attn_weights
SCALE_BY_INV_LAYER_IDX = False       # config.scale_attn_by_inverse_layer_idx

MATMUL_DTYPE = jnp.bfloat16          # MXU operand dtype for weight dots (f32 acc)
_MASK_VALUE = -1e30                  # additive causal mask; exp() underflows to 0


def _gelu_new(x):
    # GPT-2 "gelu_new" activation.
    return 0.5 * x * (1.0 + jnp.tanh(
        math.sqrt(2.0 / math.pi) * (x + 0.044715 * x * x * x)))


def _layernorm(x, gamma, beta, eps):
    mu = jnp.mean(x, axis=-1, keepdims=True)
    var = jnp.mean((x - mu) ** 2, axis=-1, keepdims=True)
    return (x - mu) * jax.lax.rsqrt(var + eps) * gamma + beta


def gpt2_block_kernel(
    x_ref,          # (rows, H) f32,  rows = batch*seq for this grid step
    vecs_ref,       # (6, H) f32: [ln1_g, ln1_b, ln2_g, ln2_b, b_attn_o, b_mlp_o]
    w_qkv_ref,      # (H, 3H) bf16 (fused c_attn weight, Conv1D layout)
    b_qkv_ref,      # (1, 3H) f32
    w_attn_o_ref,   # (H, H) bf16
    w_fc_ref,       # (H, I) bf16
    b_fc_ref,       # (1, I) f32
    w_mlp_o_ref,    # (I, H) bf16
    out_ref,        # (rows, H) f32
    *, batch, seq,
):
    H, nH, hd = HIDDEN, NUM_HEADS, HEAD_DIM
    rows = batch * seq

    x = x_ref[...].astype(jnp.float32)                       # (rows, H)

    ln1_g, ln1_b = vecs_ref[0], vecs_ref[1]
    ln2_g, ln2_b = vecs_ref[2], vecs_ref[3]
    b_attn_o, b_mlp_o = vecs_ref[4], vecs_ref[5]

    # ---------------- ln_1 ----------------
    h = _layernorm(x, ln1_g, ln1_b, LN_EPS)

    # ---------------- fused QKV projection (one MXU dot) ----------------
    qkv = jnp.dot(h.astype(MATMUL_DTYPE), w_qkv_ref[...],
                  preferred_element_type=jnp.float32) + b_qkv_ref[0]   # (rows, 3H)

    scale = 1.0
    if SCALE_ATTN_WEIGHTS:
        scale = scale / math.sqrt(float(hd))
    # (scale_attn_by_inverse_layer_idx disabled)

    # Split heads: stack every (head, batch) pair into the leading einsum batch
    # dim.  Static lane slices + leading-dim reshapes only; softmax / masking /
    # matmuls below then run ONCE, batched over all heads.
    def to_heads(col_off):                                    # -> (nH*batch, seq, hd)
        parts = [
            qkv[:, col_off + h0 * hd: col_off + (h0 + 1) * hd]
            .reshape(1, batch, seq, hd)
            for h0 in range(nH)
        ]
        return jnp.concatenate(parts, axis=0).reshape(nH * batch, seq, hd)

    q = to_heads(0 * H) * scale                               # fold 1/sqrt(hd) into q
    k = to_heads(1 * H)
    v = to_heads(2 * H)

    # additive causal mask, built exactly once
    row = jax.lax.broadcasted_iota(jnp.int32, (seq, seq), 0)
    col = jax.lax.broadcasted_iota(jnp.int32, (seq, seq), 1)
    mask_add = jnp.where(row >= col, 0.0, _MASK_VALUE).astype(jnp.float32)

    # ---------------- batched causal self-attention ----------------
    scores = jnp.einsum("bqd,bkd->bqk", q, k,
                        preferred_element_type=jnp.float32)   # (nH*batch, S, S)
    scores = scores + mask_add[None]
    scores = scores - jnp.max(scores, axis=-1, keepdims=True)
    p = jnp.exp(scores)
    denom = jnp.sum(p, axis=-1, keepdims=True)
    p = p * pl.reciprocal(denom, approx=True)                 # EUP slot

    ctx = jnp.einsum("bqk,bkd->bqd", p, v,
                     preferred_element_type=jnp.float32)      # (nH*batch, S, hd)

    # Merge heads back to lanes (one cheap concat), then ONE output projection.
    ctx = ctx.reshape(nH, rows, hd)
    ctx_cat = jnp.concatenate([ctx[h0] for h0 in range(nH)], axis=-1)   # (rows, H)
    attn_out = jnp.dot(ctx_cat.astype(MATMUL_DTYPE), w_attn_o_ref[...],
                       preferred_element_type=jnp.float32) + b_attn_o

    # residual 1
    h1 = x + attn_out

    # ---------------- ln_2 ----------------
    h2 = _layernorm(h1, ln2_g, ln2_b, LN_EPS)

    # ---------------- MLP ----------------
    a = jnp.dot(h2.astype(MATMUL_DTYPE), w_fc_ref[...],
                preferred_element_type=jnp.float32) + b_fc_ref[0]
    a = _gelu_new(a)
    m = jnp.dot(a.astype(MATMUL_DTYPE), w_mlp_o_ref[...],
                preferred_element_type=jnp.float32) + b_mlp_o

    # residual 2  (H=64 < 128 lanes -> masked store; lane-dense at real sizes)
    out_ref[...] = (h1 + m).astype(out_ref.dtype)


def pack_params(params):
    """One-time packing of GPT2Block weights into the kernel layout.

    Call this ONCE and reuse the result: it performs all bf16 casts and the
    (6, H) vector packing so no repack traffic runs on the per-forward path.
    """
    f32 = jnp.float32
    vecs = jnp.concatenate(
        [params["ln1_g"], params["ln1_b"],
         params["ln2_g"], params["ln2_b"],
         params["b_attn_o"], params["b_mlp_o"]], axis=0).astype(f32)   # (6, H)
    return {
        "vecs": vecs,
        "w_qkv": params["w_qkv"].astype(MATMUL_DTYPE),        # (H, 3H), fused
        "b_qkv": params["b_qkv"].astype(f32),                  # (1, 3H)
        "w_attn_o": params["w_attn_o"].astype(MATMUL_DTYPE),   # (H, H)
        "w_fc": params["w_fc"].astype(MATMUL_DTYPE),           # (H, I)
        "b_fc": params["b_fc"].astype(f32),                     # (1, I)
        "w_mlp_o": params["w_mlp_o"].astype(MATMUL_DTYPE),     # (I, H)
    }


def gpt2_block(x, packed, *, batch_shards=1):
    """x: (B, S, H) float32.  packed: output of pack_params().

    batch_shards=1 -> single invocation (best on single-TC v5e/v6e).
    batch_shards=2 -> batch-sharded parallel grid so both v7x TensorCores run.
    """
    B, S, H = x.shape
    assert H == HIDDEN and H % NUM_HEADS == 0
    assert B % batch_shards == 0
    BS = B * S
    rows = BS // batch_shards
    x2d = x.reshape(BS, H)

    const = lambda i: (0, 0)   # weights / vectors: resident, never re-fetched
    in_specs = [
        pl.BlockSpec((rows, H), lambda i: (i, 0)),        # x rows for this shard
        pl.BlockSpec((6, H), const),                      # packed ln/bias vectors
        pl.BlockSpec((H, 3 * H), const),                  # w_qkv
        pl.BlockSpec((1, 3 * H), const),                  # b_qkv
        pl.BlockSpec((H, H), const),                      # w_attn_o
        pl.BlockSpec((H, INNER), const),                  # w_fc
        pl.BlockSpec((1, INNER), const),                  # b_fc
        pl.BlockSpec((INNER, H), const),                  # w_mlp_o
    ]

    out2d = pl.pallas_call(
        functools.partial(gpt2_block_kernel, batch=B // batch_shards, seq=S),
        out_shape=jax.ShapeDtypeStruct((BS, H), x.dtype),
        grid=(batch_shards,),
        in_specs=in_specs,
        out_specs=pl.BlockSpec((rows, H), lambda i: (i, 0)),
        compiler_params=pltpu.CompilerParams(
            dimension_semantics=("parallel",)),
    )(
        x2d,
        packed["vecs"],
        packed["w_qkv"], packed["b_qkv"],
        packed["w_attn_o"],
        packed["w_fc"], packed["b_fc"],
        packed["w_mlp_o"],
    )
    return out2d.reshape(B, S, H)


def init_params(key):
    """Deterministic synthetic parameters matching GPT2Block shapes.
    Conv1D(nf, nx) has weight (nx, nf), bias (nf,); biases kept as (1, nf)."""
    ks = jax.random.split(key, 8)
    std = 0.02
    return {
        "ln1_g": jnp.ones((1, HIDDEN), jnp.float32),
        "ln1_b": jnp.zeros((1, HIDDEN), jnp.float32),
        "w_qkv": jax.random.normal(ks[0], (HIDDEN, 3 * HIDDEN), jnp.float32) * std,
        "b_qkv": jax.random.normal(ks[1], (1, 3 * HIDDEN), jnp.float32) * std,
        "w_attn_o": jax.random.normal(ks[2], (HIDDEN, HIDDEN), jnp.float32) * std,
        "b_attn_o": jax.random.normal(ks[3], (1, HIDDEN), jnp.float32) * std,
        "ln2_g": jnp.ones((1, HIDDEN), jnp.float32),
        "ln2_b": jnp.zeros((1, HIDDEN), jnp.float32),
        "w_fc": jax.random.normal(ks[4], (HIDDEN, INNER), jnp.float32) * std,
        "b_fc": jax.random.normal(ks[5], (1, INNER), jnp.float32) * std,
        "w_mlp_o": jax.random.normal(ks[6], (INNER, HIDDEN), jnp.float32) * std,
        "b_mlp_o": jax.random.normal(ks[7], (1, HIDDEN), jnp.float32) * std,
    }


def gpt2_block_ref(x, p):
    """Pure-JAX f32 reference mirroring the PyTorch eager forward (no dropout)."""
    B, S, H = x.shape

    def ln(z, g, b):
        mu = jnp.mean(z, axis=-1, keepdims=True)
        var = jnp.mean((z - mu) ** 2, axis=-1, keepdims=True)
        return (z - mu) / jnp.sqrt(var + LN_EPS) * g + b

    h = ln(x, p["ln1_g"][0], p["ln1_b"][0])
    qkv = h @ p["w_qkv"] + p["b_qkv"][0]
    q, k, v = jnp.split(qkv, 3, axis=-1)

    def split_heads(t):  # (B,S,H) -> (B,nH,S,hd)
        return t.reshape(B, S, NUM_HEADS, HEAD_DIM).transpose(0, 2, 1, 3)

    q, k, v = split_heads(q), split_heads(k), split_heads(v)
    scores = jnp.einsum("bhqd,bhkd->bhqk", q, k)
    if SCALE_ATTN_WEIGHTS:
        scores = scores / math.sqrt(float(HEAD_DIM))
    causal = jnp.tril(jnp.ones((S, S), bool))
    scores = jnp.where(causal[None, None], scores, jnp.finfo(jnp.float32).min)
    w = jax.nn.softmax(scores, axis=-1)
    ctx = jnp.einsum("bhqk,bhkd->bhqd", w, v)
    ctx = ctx.transpose(0, 2, 1, 3).reshape(B, S, H)
    attn_out = ctx @ p["w_attn_o"] + p["b_attn_o"][0]
    h1 = x + attn_out

    h2 = ln(h1, p["ln2_g"][0], p["ln2_b"][0])
    a = _gelu_new(h2 @ p["w_fc"] + p["b_fc"][0])
    m = a @ p["w_mlp_o"] + p["b_mlp_o"][0]
    return h1 + m


if __name__ == "__main__":
    key = jax.random.PRNGKey(0)
    kx, kp = jax.random.split(key)
    x = jax.random.normal(kx, (BATCH, SEQ, HIDDEN), jnp.float32)
    params = init_params(kp)

    # One-time weight packing, hoisted out of the forward path.
    packed = pack_params(params)
    packed = jax.tree_util.tree_map(jax.block_until_ready, packed)

    ref = gpt2_block_ref(x, params)

    # Single-invocation form (v5e/v6e: one TensorCore).
    out = gpt2_block(x, packed)
    out = jax.block_until_ready(out)
    assert out.shape == (BATCH, SEQ, HIDDEN)
    # bf16 matmul operands + approx reciprocal -> loosen tolerance vs f32 reference.
    assert jnp.allclose(out, ref, atol=1e-2, rtol=1e-2), (
        float(jnp.max(jnp.abs(out - ref))))

    # Batch-sharded parallel-grid form (v7x: uses both TensorCores).
    out2 = gpt2_block(x, packed, batch_shards=2)
    out2 = jax.block_until_ready(out2)
    assert jnp.allclose(out2, ref, atol=1e-2, rtol=1e-2), (
        float(jnp.max(jnp.abs(out2 - ref))))

    print("KERNEL_OK")
</pallas_src>

<mosaic_0001>
module attributes {stable_mosaic.version = 11 : i64} {
  func.func @gpt2_block_kernel(%arg0: i32, %arg1: memref<16x64xf32, #tpu.memory_space<vmem>>, %arg2: memref<6x64xf32, #tpu.memory_space<vmem>>, %arg3: memref<64x192xbf16, #tpu.memory_space<vmem>>, %arg4: memref<1x192xf32, #tpu.memory_space<vmem>>, %arg5: memref<64x64xbf16, #tpu.memory_space<vmem>>, %arg6: memref<64x256xbf16, #tpu.memory_space<vmem>>, %arg7: memref<1x256xf32, #tpu.memory_space<vmem>>, %arg8: memref<256x64xbf16, #tpu.memory_space<vmem>>, %arg9: memref<16x64xf32, #tpu.memory_space<vmem>>) attributes {dimension_semantics = [#tpu.dimension_semantics<parallel>], iteration_bounds = array<i64: 1>, scalar_prefetch = 0 : i64, scratch_operands = 0 : i64, tpu.core_type = #tpu.core_type<tc>, window_params = [{transform_indices = @transform_0, window_bounds = array<i64: 16, 64>}, {pipeline_mode = #tpu.pipeline_mode<synchronous>, transform_indices = @transform_1, window_bounds = array<i64: 6, 64>}, {pipeline_mode = #tpu.pipeline_mode<synchronous>, transform_indices = @transform_2, window_bounds = array<i64: 64, 192>}, {pipeline_mode = #tpu.pipeline_mode<synchronous>, transform_indices = @transform_3, window_bounds = array<i64: 1, 192>}, {pipeline_mode = #tpu.pipeline_mode<synchronous>, transform_indices = @transform_4, window_bounds = array<i64: 64, 64>}, {pipeline_mode = #tpu.pipeline_mode<synchronous>, transform_indices = @transform_5, window_bounds = array<i64: 64, 256>}, {pipeline_mode = #tpu.pipeline_mode<synchronous>, transform_indices = @transform_6, window_bounds = array<i64: 1, 256>}, {pipeline_mode = #tpu.pipeline_mode<synchronous>, transform_indices = @transform_7, window_bounds = array<i64: 256, 64>}, {transform_indices = @transform_8, window_bounds = array<i64: 16, 64>}]} {
    %c0 = arith.constant 0 : index
    %c0_0 = arith.constant 0 : index
    %0 = vector.load %arg1[%c0, %c0_0] : memref<16x64xf32, #tpu.memory_space<vmem>>, vector<16x64xf32>
    %c0_1 = arith.constant 0 : index
    %c0_2 = arith.constant 0 : index
    %1 = vector.load %arg2[%c0_1, %c0_2] : memref<6x64xf32, #tpu.memory_space<vmem>>, vector<1x64xf32>
    %2 = vector.shape_cast %1 : vector<1x64xf32> to vector<64xf32>
    %c1 = arith.constant 1 : index
    %c0_3 = arith.constant 0 : index
    %3 = vector.load %arg2[%c1, %c0_3] : memref<6x64xf32, #tpu.memory_space<vmem>>, vector<1x64xf32>
    %4 = vector.shape_cast %3 : vector<1x64xf32> to vector<64xf32>
    %c2 = arith.constant 2 : index
    %c0_4 = arith.constant 0 : index
    %5 = vector.load %arg2[%c2, %c0_4] : memref<6x64xf32, #tpu.memory_space<vmem>>, vector<1x64xf32>
    %6 = vector.shape_cast %5 : vector<1x64xf32> to vector<64xf32>
    %c3 = arith.constant 3 : index
    %c0_5 = arith.constant 0 : index
    %7 = vector.load %arg2[%c3, %c0_5] : memref<6x64xf32, #tpu.memory_space<vmem>>, vector<1x64xf32>
    %8 = vector.shape_cast %7 : vector<1x64xf32> to vector<64xf32>
    %c4 = arith.constant 4 : index
    %c0_6 = arith.constant 0 : index
    %9 = vector.load %arg2[%c4, %c0_6] : memref<6x64xf32, #tpu.memory_space<vmem>>, vector<1x64xf32>
    %10 = vector.shape_cast %9 : vector<1x64xf32> to vector<64xf32>
    %c5 = arith.constant 5 : index
    %c0_7 = arith.constant 0 : index
    %11 = vector.load %arg2[%c5, %c0_7] : memref<6x64xf32, #tpu.memory_space<vmem>>, vector<1x64xf32>
    %12 = vector.shape_cast %11 : vector<1x64xf32> to vector<64xf32>
    %cst = arith.constant dense<0.000000e+00> : vector<16xf32>
    %13 = vector.multi_reduction <add>, %0, %cst [1] : vector<16x64xf32> to vector<16xf32>
    %14 = vector.shape_cast %13 : vector<16xf32> to vector<16x1xf32>
    %cst_8 = arith.constant 6.400000e+01 : f32
    %15 = vector.broadcast %cst_8 : f32 to vector<16x1xf32>
    %16 = arith.divf %14, %15 : vector<16x1xf32>
    %17 = vector.broadcast %16 : vector<16x1xf32> to vector<16x64xf32>
    %18 = arith.subf %0, %17 : vector<16x64xf32>
    %19 = arith.mulf %18, %18 : vector<16x64xf32>
    %cst_9 = arith.constant dense<0.000000e+00> : vector<16xf32>
    %20 = vector.multi_reduction <add>, %19, %cst_9 [1] : vector<16x64xf32> to vector<16xf32>
    %21 = vector.shape_cast %20 : vector<16xf32> to vector<16x1xf32>
    %cst_10 = arith.constant 6.400000e+01 : f32
    %22 = vector.broadcast %cst_10 : f32 to vector<16x1xf32>
    %23 = arith.divf %21, %22 : vector<16x1xf32>
    %24 = vector.broadcast %16 : vector<16x1xf32> to vector<16x64xf32>
    %25 = arith.subf %0, %24 : vector<16x64xf32>
    %cst_11 = arith.constant 9.99999974E-6 : f32
    %26 = vector.broadcast %cst_11 : f32 to vector<16x1xf32>
    %27 = arith.addf %23, %26 : vector<16x1xf32>
    %28 = math.rsqrt %27 : vector<16x1xf32>
    %29 = vector.broadcast %28 : vector<16x1xf32> to vector<16x64xf32>
    %30 = arith.mulf %25, %29 : vector<16x64xf32>
    %31 = vector.shape_cast %2 : vector<64xf32> to vector<1x64xf32>
    %32 = vector.broadcast %31 : vector<1x64xf32> to vector<16x64xf32>
    %33 = arith.mulf %30, %32 : vector<16x64xf32>
    %34 = vector.shape_cast %4 : vector<64xf32> to vector<1x64xf32>
    %35 = vector.broadcast %34 : vector<1x64xf32> to vector<16x64xf32>
    %36 = arith.addf %33, %35 : vector<16x64xf32>
    %37 = arith.truncf %36 : vector<16x64xf32> to vector<16x64xbf16>
    %c0_12 = arith.constant 0 : index
    %c0_13 = arith.constant 0 : index
    %38 = vector.load %arg3[%c0_12, %c0_13] : memref<64x192xbf16, #tpu.memory_space<vmem>>, vector<64x192xbf16>
    %cst_14 = arith.constant dense<0.000000e+00> : vector<16x192xf32>
    %39 = tpu.matmul %37, %38, %cst_14 {dimension_numbers = #tpu.dot_dimension_numbers<[1], [0], [0], [1], [0, 0, 1, 1], [], []>} : vector<16x64xbf16>, vector<64x192xbf16>, vector<16x192xf32> -> vector<16x192xf32>
    %c0_15 = arith.constant 0 : index
    %c0_16 = arith.constant 0 : index
    %40 = vector.load %arg4[%c0_15, %c0_16] : memref<1x192xf32, #tpu.memory_space<vmem>>, vector<1x192xf32>
    %41 = vector.shape_cast %40 : vector<1x192xf32> to vector<192xf32>
    %42 = vector.shape_cast %41 : vector<192xf32> to vector<1x192xf32>
    %43 = vector.broadcast %42 : vector<1x192xf32> to vector<16x192xf32>
    %44 = arith.addf %39, %43 : vector<16x192xf32>
    %45 = vector.extract_strided_slice %44 {offsets = [0, 0], sizes = [16, 16], strides = [1, 1]} : vector<16x192xf32> to vector<16x16xf32>
    %46 = vector.shape_cast %45 : vector<16x16xf32> to vector<1x2x8x16xf32>
    %47 = vector.extract_strided_slice %44 {offsets = [0, 16], sizes = [16, 16], strides = [1, 1]} : vector<16x192xf32> to vector<16x16xf32>
    %48 = vector.shape_cast %47 : vector<16x16xf32> to vector<1x2x8x16xf32>
    %49 = vector.extract_strided_slice %44 {offsets = [0, 32], sizes = [16, 16], strides = [1, 1]} : vector<16x192xf32> to vector<16x16xf32>
    %50 = vector.shape_cast %49 : vector<16x16xf32> to vector<1x2x8x16xf32>
    %51 = vector.extract_strided_slice %44 {offsets = [0, 48], sizes = [16, 16], strides = [1, 1]} : vector<16x192xf32> to vector<16x16xf32>
    %52 = vector.shape_cast %51 : vector<16x16xf32> to vector<1x2x8x16xf32>
    %53 = tpu.concatenate %46, %48, %50, %52 in 0 : vector<1x2x8x16xf32>, vector<1x2x8x16xf32>, vector<1x2x8x16xf32>, vector<1x2x8x16xf32> -> vector<4x2x8x16xf32>
    %54 = vector.shape_cast %53 : vector<4x2x8x16xf32> to vector<8x8x16xf32>
    %cst_17 = arith.constant 2.500000e-01 : f32
    %55 = vector.broadcast %cst_17 : f32 to vector<8x8x16xf32>
    %56 = arith.mulf %54, %55 : vector<8x8x16xf32>
    %57 = vector.extract_strided_slice %44 {offsets = [0, 64], sizes = [16, 16], strides = [1, 1]} : vector<16x192xf32> to vector<16x16xf32>
    %58 = vector.shape_cast %57 : vector<16x16xf32> to vector<1x2x8x16xf32>
    %59 = vector.extract_strided_slice %44 {offsets = [0, 80], sizes = [16, 16], strides = [1, 1]} : vector<16x192xf32> to vector<16x16xf32>
    %60 = vector.shape_cast %59 : vector<16x16xf32> to vector<1x2x8x16xf32>
    %61 = vector.extract_strided_slice %44 {offsets = [0, 96], sizes = [16, 16], strides = [1, 1]} : vector<16x192xf32> to vector<16x16xf32>
    %62 = vector.shape_cast %61 : vector<16x16xf32> to vector<1x2x8x16xf32>
    %63 = vector.extract_strided_slice %44 {offsets = [0, 112], sizes = [16, 16], strides = [1, 1]} : vector<16x192xf32> to vector<16x16xf32>
    %64 = vector.shape_cast %63 : vector<16x16xf32> to vector<1x2x8x16xf32>
    %65 = tpu.concatenate %58, %60, %62, %64 in 0 : vector<1x2x8x16xf32>, vector<1x2x8x16xf32>, vector<1x2x8x16xf32>, vector<1x2x8x16xf32> -> vector<4x2x8x16xf32>
    %66 = vector.shape_cast %65 : vector<4x2x8x16xf32> to vector<8x8x16xf32>
    %67 = vector.extract_strided_slice %44 {offsets = [0, 128], sizes = [16, 16], strides = [1, 1]} : vector<16x192xf32> to vector<16x16xf32>
    %68 = vector.shape_cast %67 : vector<16x16xf32> to vector<1x2x8x16xf32>
    %69 = vector.extract_strided_slice %44 {offsets = [0, 144], sizes = [16, 16], strides = [1, 1]} : vector<16x192xf32> to vector<16x16xf32>
    %70 = vector.shape_cast %69 : vector<16x16xf32> to vector<1x2x8x16xf32>
    %71 = vector.extract_strided_slice %44 {offsets = [0, 160], sizes = [16, 16], strides = [1, 1]} : vector<16x192xf32> to vector<16x16xf32>
    %72 = vector.shape_cast %71 : vector<16x16xf32> to vector<1x2x8x16xf32>
    %73 = vector.extract_strided_slice %44 {offsets = [0, 176], sizes = [16, 16], strides = [1, 1]} : vector<16x192xf32> to vector<16x16xf32>
    %74 = vector.shape_cast %73 : vector<16x16xf32> to vector<1x2x8x16xf32>
    %75 = tpu.concatenate %68, %70, %72, %74 in 0 : vector<1x2x8x16xf32>, vector<1x2x8x16xf32>, vector<1x2x8x16xf32>, vector<1x2x8x16xf32> -> vector<4x2x8x16xf32>
    %76 = vector.shape_cast %75 : vector<4x2x8x16xf32> to vector<8x8x16xf32>
    %77 = tpu.iota {dimensions = array<i32: 0>} : vector<8x8xi32>
    %78 = tpu.iota {dimensions = array<i32: 1>} : vector<8x8xi32>
    %79 = arith.cmpi sge, %77, %78 : vector<8x8xi32>
    %cst_18 = arith.constant 0.000000e+00 : f32
    %cst_19 = arith.constant -1.000000e+30 : f32
    %80 = vector.broadcast %cst_18 : f32 to vector<8x8xf32>
    %81 = vector.broadcast %cst_19 : f32 to vector<8x8xf32>
    %82 = arith.select %79, %80, %81 : vector<8x8xi1>, vector<8x8xf32>
    "tpu.trace_start"() <{level = 10 : i32, message = "bqd,bkd->bqk"}> : () -> ()
    %cst_20 = arith.constant dense<0.000000e+00> : vector<8x8x8xf32>
    %83 = tpu.matmul %56, %66, %cst_20 {dimension_numbers = #tpu.dot_dimension_numbers<[2], [2], [1], [1], [0, 0, 0, 1, 1, 1], [0], [0]>} : vector<8x8x16xf32>, vector<8x8x16xf32>, vector<8x8x8xf32> -> vector<8x8x8xf32>
    "tpu.trace_stop"() : () -> ()
    %84 = vector.shape_cast %82 : vector<8x8xf32> to vector<1x8x8xf32>
    %85 = vector.broadcast %84 : vector<1x8x8xf32> to vector<8x8x8xf32>
    %86 = arith.addf %83, %85 : vector<8x8x8xf32>
    %cst_21 = arith.constant dense<0xFF800000> : vector<8x8xf32>
    %87 = vector.multi_reduction <maximumf>, %86, %cst_21 [2] : vector<8x8x8xf32> to vector<8x8xf32>
    %88 = vector.shape_cast %87 : vector<8x8xf32> to vector<8x8x1xf32>
    %89 = vector.broadcast %88 : vector<8x8x1xf32> to vector<8x8x8xf32>
    %90 = arith.subf %86, %89 : vector<8x8x8xf32>
    %91 = math.exp %90 : vector<8x8x8xf32>
    %cst_22 = arith.constant dense<0.000000e+00> : vector<8x8xf32>
    %92 = vector.multi_reduction <add>, %91, %cst_22 [2] : vector<8x8x8xf32> to vector<8x8xf32>
    %93 = vector.shape_cast %92 : vector<8x8xf32> to vector<8x8x1xf32>
    %94 = tpu.reciprocal %93 {approx = true} : vector<8x8x1xf32> -> vector<8x8x1xf32>
    %95 = vector.broadcast %94 : vector<8x8x1xf32> to vector<8x8x8xf32>
    %96 = arith.mulf %91, %95 : vector<8x8x8xf32>
    "tpu.trace_start"() <{level = 10 : i32, message = "bqk,bkd->bqd"}> : () -> ()
    %cst_23 = arith.constant dense<0.000000e+00> : vector<8x8x16xf32>
    %97 = tpu.matmul %96, %76, %cst_23 {dimension_numbers = #tpu.dot_dimension_numbers<[2], [1], [1], [2], [0, 0, 0, 1, 1, 2], [0], [0]>} : vector<8x8x8xf32>, vector<8x8x16xf32>, vector<8x8x16xf32> -> vector<8x8x16xf32>
    "tpu.trace_stop"() : () -> ()
    %98 = vector.shape_cast %97 : vector<8x8x16xf32> to vector<4x16x16xf32>
    %99 = vector.extract_strided_slice %98 {offsets = [0, 0, 0], sizes = [1, 16, 16], strides = [1, 1, 1]} : vector<4x16x16xf32> to vector<1x16x16xf32>
    %100 = vector.shape_cast %99 : vector<1x16x16xf32> to vector<16x16xf32>
    %101 = vector.extract_strided_slice %98 {offsets = [1, 0, 0], sizes = [1, 16, 16], strides = [1, 1, 1]} : vector<4x16x16xf32> to vector<1x16x16xf32>
    %102 = vector.shape_cast %101 : vector<1x16x16xf32> to vector<16x16xf32>
    %103 = vector.extract_strided_slice %98 {offsets = [2, 0, 0], sizes = [1, 16, 16], strides = [1, 1, 1]} : vector<4x16x16xf32> to vector<1x16x16xf32>
    %104 = vector.shape_cast %103 : vector<1x16x16xf32> to vector<16x16xf32>
    %105 = vector.extract_strided_slice %98 {offsets = [3, 0, 0], sizes = [1, 16, 16], strides = [1, 1, 1]} : vector<4x16x16xf32> to vector<1x16x16xf32>
    %106 = vector.shape_cast %105 : vector<1x16x16xf32> to vector<16x16xf32>
    %107 = tpu.concatenate %100, %102, %104, %106 in 1 : vector<16x16xf32>, vector<16x16xf32>, vector<16x16xf32>, vector<16x16xf32> -> vector<16x64xf32>
    %108 = arith.truncf %107 : vector<16x64xf32> to vector<16x64xbf16>
    %c0_24 = arith.constant 0 : index
    %c0_25 = arith.constant 0 : index
    %109 = vector.load %arg5[%c0_24, %c0_25] : memref<64x64xbf16, #tpu.memory_space<vmem>>, vector<64x64xbf16>
    %cst_26 = arith.constant dense<0.000000e+00> : vector<16x64xf32>
    %110 = tpu.matmul %108, %109, %cst_26 {dimension_numbers = #tpu.dot_dimension_numbers<[1], [0], [0], [1], [0, 0, 1, 1], [], []>} : vector<16x64xbf16>, vector<64x64xbf16>, vector<16x64xf32> -> vector<16x64xf32>
    %111 = vector.shape_cast %10 : vector<64xf32> to vector<1x64xf32>
    %112 = vector.broadcast %111 : vector<1x64xf32> to vector<16x64xf32>
    %113 = arith.addf %110, %112 : vector<16x64xf32>
    %114 = arith.addf %0, %113 : vector<16x64xf32>
    %cst_27 = arith.constant dense<0.000000e+00> : vector<16xf32>
    %115 = vector.multi_reduction <add>, %114, %cst_27 [1] : vector<16x64xf32> to vector<16xf32>
    %116 = vector.shape_cast %115 : vector<16xf32> to vector<16x1xf32>
    %cst_28 = arith.constant 6.400000e+01 : f32
    %117 = vector.broadcast %cst_28 : f32 to vector<16x1xf32>
    %118 = arith.divf %116, %117 : vector<16x1xf32>
    %119 = vector.broadcast %118 : vector<16x1xf32> to vector<16x64xf32>
    %120 = arith.subf %114, %119 : vector<16x64xf32>
    %121 = arith.mulf %120, %120 : vector<16x64xf32>
    %cst_29 = arith.constant dense<0.000000e+00> : vector<16xf32>
    %122 = vector.multi_reduction <add>, %121, %cst_29 [1] : vector<16x64xf32> to vector<16xf32>
    %123 = vector.shape_cast %122 : vector<16xf32> to vector<16x1xf32>
    %cst_30 = arith.constant 6.400000e+01 : f32
    %124 = vector.broadcast %cst_30 : f32 to vector<16x1xf32>
    %125 = arith.divf %123, %124 : vector<16x1xf32>
    %126 = vector.broadcast %118 : vector<16x1xf32> to vector<16x64xf32>
    %127 = arith.subf %114, %126 : vector<16x64xf32>
    %cst_31 = arith.constant 9.99999974E-6 : f32
    %128 = vector.broadcast %cst_31 : f32 to vector<16x1xf32>
    %129 = arith.addf %125, %128 : vector<16x1xf32>
    %130 = math.rsqrt %129 : vector<16x1xf32>
    %131 = vector.broadcast %130 : vector<16x1xf32> to vector<16x64xf32>
    %132 = arith.mulf %127, %131 : vector<16x64xf32>
    %133 = vector.shape_cast %6 : vector<64xf32> to vector<1x64xf32>
    %134 = vector.broadcast %133 : vector<1x64xf32> to vector<16x64xf32>
    %135 = arith.mulf %132, %134 : vector<16x64xf32>
    %136 = vector.shape_cast %8 : vector<64xf32> to vector<1x64xf32>
    %137 = vector.broadcast %136 : vector<1x64xf32> to vector<16x64xf32>
    %138 = arith.addf %135, %137 : vector<16x64xf32>
    %139 = arith.truncf %138 : vector<16x64xf32> to vector<16x64xbf16>
    %c0_32 = arith.constant 0 : index
    %c0_33 = arith.constant 0 : index
    %140 = vector.load %arg6[%c0_32, %c0_33] : memref<64x256xbf16, #tpu.memory_space<vmem>>, vector<64x256xbf16>
    %cst_34 = arith.constant dense<0.000000e+00> : vector<16x256xf32>
    %141 = tpu.matmul %139, %140, %cst_34 {dimension_numbers = #tpu.dot_dimension_numbers<[1], [0], [0], [1], [0, 0, 1, 1], [], []>} : vector<16x64xbf16>, vector<64x256xbf16>, vector<16x256xf32> -> vector<16x256xf32>
    %c0_35 = arith.constant 0 : index
    %c0_36 = arith.constant 0 : index
    %142 = vector.load %arg7[%c0_35, %c0_36] : memref<1x256xf32, #tpu.memory_space<vmem>>, vector<1x256xf32>
    %143 = vector.shape_cast %142 : vector<1x256xf32> to vector<256xf32>
    %144 = vector.shape_cast %143 : vector<256xf32> to vector<1x256xf32>
    %145 = vector.broadcast %144 : vector<1x256xf32> to vector<16x256xf32>
    %146 = arith.addf %141, %145 : vector<16x256xf32>
    %cst_37 = arith.constant 5.000000e-01 : f32
    %147 = vector.broadcast %cst_37 : f32 to vector<16x256xf32>
    %148 = arith.mulf %147, %146 : vector<16x256xf32>
    %cst_38 = arith.constant 4.471500e-02 : f32
    %149 = vector.broadcast %cst_38 : f32 to vector<16x256xf32>
    %150 = arith.mulf %149, %146 : vector<16x256xf32>
    %151 = arith.mulf %150, %146 : vector<16x256xf32>
    %152 = arith.mulf %151, %146 : vector<16x256xf32>
    %153 = arith.addf %146, %152 : vector<16x256xf32>
    %cst_39 = arith.constant 0.797884583 : f32
    %154 = vector.broadcast %cst_39 : f32 to vector<16x256xf32>
    %155 = arith.mulf %154, %153 : vector<16x256xf32>
    %156 = math.tanh %155 : vector<16x256xf32>
    %cst_40 = arith.constant 1.000000e+00 : f32
    %157 = vector.broadcast %cst_40 : f32 to vector<16x256xf32>
    %158 = arith.addf %157, %156 : vector<16x256xf32>
    %159 = arith.mulf %148, %158 : vector<16x256xf32>
    %160 = arith.truncf %159 : vector<16x256xf32> to vector<16x256xbf16>
    %c0_41 = arith.constant 0 : index
    %c0_42 = arith.constant 0 : index
    %161 = vector.load %arg8[%c0_41, %c0_42] : memref<256x64xbf16, #tpu.memory_space<vmem>>, vector<256x64xbf16>
    %cst_43 = arith.constant dense<0.000000e+00> : vector<16x64xf32>
    %162 = tpu.matmul %160, %161, %cst_43 {dimension_numbers = #tpu.dot_dimension_numbers<[1], [0], [0], [1], [0, 0, 1, 1], [], []>} : vector<16x256xbf16>, vector<256x64xbf16>, vector<16x64xf32> -> vector<16x64xf32>
    %163 = vector.shape_cast %12 : vector<64xf32> to vector<1x64xf32>
    %164 = vector.broadcast %163 : vector<1x64xf32> to vector<16x64xf32>
    %165 = arith.addf %162, %164 : vector<16x64xf32>
    %166 = arith.addf %114, %165 : vector<16x64xf32>
    %c0_44 = arith.constant 0 : index
    %c0_45 = arith.constant 0 : index
    %167 = vector.load %arg9[%c0_44, %c0_45] : memref<16x64xf32, #tpu.memory_space<vmem>>, vector<16x64xf32>
    tpu.vector_store %arg9[%c0_44, %c0_45], %166 {strides = array<i32>} : memref<16x64xf32, #tpu.memory_space<vmem>>, vector<16x64xf32>,
    return
  }
  func.func @transform_0(%arg0: i32) -> (i32, i32) {
    %c0_i32 = arith.constant 0 : i32
    %c0_i32_0 = arith.constant 0 : i32
    return %arg0, %c0_i32 : i32, i32
  }
  func.func @transform_1(%arg0: i32) -> (i32, i32) {
    %c0_i32 = arith.constant 0 : i32
    %c0_i32_0 = arith.constant 0 : i32
    %c0_i32_1 = arith.constant 0 : i32
    return %c0_i32, %c0_i32_0 : i32, i32
  }
  func.func @transform_2(%arg0: i32) -> (i32, i32) {
    %c0_i32 = arith.constant 0 : i32
    %c0_i32_0 = arith.constant 0 : i32
    %c0_i32_1 = arith.constant 0 : i32
    return %c0_i32, %c0_i32_0 : i32, i32
  }
  func.func @transform_3(%arg0: i32) -> (i32, i32) {
    %c0_i32 = arith.constant 0 : i32
    %c0_i32_0 = arith.constant 0 : i32
    %c0_i32_1 = arith.constant 0 : i32
    return %c0_i32, %c0_i32_0 : i32, i32
  }
  func.func @transform_4(%arg0: i32) -> (i32, i32) {
    %c0_i32 = arith.constant 0 : i32
    %c0_i32_0 = arith.constant 0 : i32
    %c0_i32_1 = arith.constant 0 : i32
    return %c0_i32, %c0_i32_0 : i32, i32
  }
  func.func @transform_5(%arg0: i32) -> (i32, i32) {
    %c0_i32 = arith.constant 0 : i32
    %c0_i32_0 = arith.constant 0 : i32
    %c0_i32_1 = arith.constant 0 : i32
    return %c0_i32, %c0_i32_0 : i32, i32
  }
  func.func @transform_6(%arg0: i32) -> (i32, i32) {
    %c0_i32 = arith.constant 0 : i32
    %c0_i32_0 = arith.constant 0 : i32
    %c0_i32_1 = arith.constant 0 : i32
    return %c0_i32, %c0_i32_0 : i32, i32
  }
  func.func @transform_7(%arg0: i32) -> (i32, i32) {
    %c0_i32 = arith.constant 0 : i32
    %c0_i32_0 = arith.constant 0 : i32
    %c0_i32_1 = arith.constant 0 : i32
    return %c0_i32, %c0_i32_0 : i32, i32
  }
  func.func @transform_8(%arg0: i32) -> (i32, i32) {
    %c0_i32 = arith.constant 0 : i32
    %c0_i32_0 = arith.constant 0 : i32
    return %arg0, %c0_i32 : i32, i32
  }
}

</mosaic_0001>

<bundles_post_ra>
// kernel: tpu_custom_call.1
= control target key start
LH: loop header
LB: loop body
LE: loop exit
PB: predicated region body
PF: predicated region fallthrough
CT: control target
= control target key end

     0   :  { %vm39_vm0 = vcmask 523264   ;;  %s2783_s0 = inlined_call_operand.vmem [shape: f32[16,64], index: 0, kind: input, shape index: {}]   ;;  %s2784_s1 = inlined_call_operand.vmem [shape: f32[6,64], index: 1, kind: input, shape index: {}]   ;;  %s2785_s2 = inlined_call_operand.vmem [shape: bf16[64,192], index: 2, kind: input, shape index: {}]   ;;  %s2786_s3 = inlined_call_operand.vmem [shape: f32[1,192], index: 3, kind: input, shape index: {}]   ;;  %s2787_s4 = inlined_call_operand.vmem [shape: bf16[64,64], index: 4, kind: input, shape index: {}]   ;;  %s2788_s5 = inlined_call_operand.vmem [shape: bf16[64,256], index: 5, kind: input, shape index: {}]   ;;  %s2789_s6 = inlined_call_operand.vmem [shape: f32[1,256], index: 6, kind: input, shape index: {}]   ;;  %s2790_s7 = inlined_call_operand.vmem [shape: bf16[256,64], index: 7, kind: input, shape index: {}]   ;;  %s2791_s8 = inlined_call_operand.hbm [shape: f32[16,64], index: 8, kind: output, shape index: {}]  }
   0x1   :  { %v2448_v0 = vld [vmem:[%s2783_s0] sm:$0xff]  ;;  %v2453_v1 = vld [vmem:[%s2783_s0 + $0x8] sm:$0xff] }
   0x2   :  { %v40_v2 = vsel %vm39_vm0, %v2448_v0, 0.0  ;;  %v43_v3 = vsel %vm39_vm0, %v2453_v1, 0.0 }
   0x3   :  { %41 = vadd.xlane.f32.xlu0 %v40_v2 }
   0x7   :  { %44 = vadd.xlane.f32.xlu0 %v43_v3 }
   0x8   :  { %13 = vsyncpa [#allocation3], 0  ;;  %v2270_v14 = vld [vmem:[%s2785_s2 + $0x4] ss:$8 sps:$4 sm:$0xff]   ;;  %v2272_v15 = vld [vmem:[%s2785_s2] ss:$8 sps:$4 sm:$0xff]   ;;  %v90_v40 = vlaneseq }
   0x9   :  { %143 = vmatprep.subr.bf16.mxu0 %v2270_v14  ;;  %v2273_v16 = vld [vmem:[%s2785_s2 + $0x14] ss:$8 sps:$4 sm:$0xff]   ;;  %v2275_v17 = vld [vmem:[%s2785_s2 + $0x10] ss:$8 sps:$4 sm:$0xff]   ;;  %v2276_v18 = vld [vmem:[%s2785_s2 + $0x24] ss:$8 sps:$4 sm:$0xff]  }
   0xa   :  { %144 = vmatpush1.bf16.msra.mxu0 %v2272_v15  ;;  %v2278_v19 = vld [vmem:[%s2785_s2 + $0x20] ss:$8 sps:$4 sm:$0xff]   ;;  %v2279_v20 = vld [vmem:[%s2785_s2 + $0x34] ss:$8 sps:$4 sm:$0xff]   ;;  %v2281_v21 = vld [vmem:[%s2785_s2 + $0x30] ss:$8 sps:$4 sm:$0xff]  }
   0xb   :  { %145 = vmatprep.subr.bf16.mxu0 %v2273_v16  ;;  %v2386_v22 = vmov 0   ;;  %v2021_v31 = vld [vmem:[%s2784_s1] ss:$0 sm:$0xff]  ;;  %v2022_v35 = vld [vmem:[%s2784_s1 + $0x1] ss:$0 sm:$0xff]  ;;  %v2496_v41 = vshrl.u32 %v90_v40, 7 }
   0xc   :  { %175 = vmatprep.mubr.bf16.mxu0 %v2386_v22  ;;  %v2502_v43 = vld [vmem:[%s2786_s3] sm:$0x3]  ;;  %v2387_v44 = vmov 0.0   ;;  %vm2388_vm1 = vmmov 0   ;;  %s2389_s3 = smov 96   ;;  %s2390_s29 = smov 112  }
   0xd   :  { %v92_v42 = vsub.s32 0, %v2496_v41  ;;  %2149 = vmatprep.subr.mxu1 %v2387_v44  ;;  %2151 = vmatprep.mubr.msk.f32.mxu1 %vm2388_vm1, %v2387_v44  ;;  %s2391_s30 = smov 80   ;;  %s2392_s0 = smov 64   ;;  %vm242_vm2 = vcmask 130048   ;;  %v237_v16 = vand.u32 127, %v90_v40  ;;  %vm857_vm4 = vcmask 64512  }
   0xe   :  { %146 = vmatpush1.bf16.msra.mxu0 %v2275_v17  ;;  %v2393_v17 = vmov -1e+30   ;;  %s2394_s17 = smov 16   ;;  %s2395_s18 = smov 32   ;;  %vm1556_vm5 = vcmask 261120   ;;  %vm1559_vm6 = vcmask 392192  }
   0xf   :  { %147 = vmatprep.subr.bf16.mxu0 %v2276_v18  ;;  %v93_v45 = vrot.slane %v2502_v43, %v92_v42  ;;  %vm238_vm3 = vcmp.ge.s32.totalorder %v2496_v41, %v237_v16  ;;  %s2396_s19 = smov 48   ;;  %s2397_s21 = smov [#allocation2]  }
  0x10   :  { %v239_v18 = vsel %vm238_vm3, 0.0, %v2393_v17  ;;  %s2010_s22 = sshll.u32 %s2397_s21, 4  ;;  %s2011_s22 = int_to_ptr.vmem [resolvable:$true] %s2010_s22 }
  0x11   :  { %s2362_s23 = scalar_lea.vmem %s2011_s22, 256  ;;  %p2367_p1 = scmp.lt.s32.totalorder %s2011_s22, %s2011_s22 }
  0x12   :  { %148 = vmatpush1.bf16.msra.mxu0 %v2278_v19  ;;  %p2363_p0 = scmp.ne.s32.totalorder %s2011_s22, %s2362_s23  ;;  %p2368_p2 = scmp.lt.s32.totalorder %s2362_s23, %s2362_s23 }
  0x13   :  { %149 = vmatprep.subr.bf16.mxu0 %v2279_v20 }
  0x14   :  { %p2369_p3 = por %p2368_p2, %p2367_p1 }
  0x16   :  { %150 = vmatpush1.bf16.msra.mxu0 %v2281_v21  ;;  %p2370_p4 = pnand %p2369_p3, %p2363_p0 }
  0x17   :  { %2174 = vmatprep.subr.mxu0 %v2387_v44 }
  0x90   :  { %v42_v4 = vpop.xlane.xlu0 %41 }
  0x91   :  { %v47_v5 = vmul.f32 0.015625, %v42_v4 }
  0x93   :  { %v49_v6 = vsub.f32 %v2448_v0, %v47_v5  ;;  %v96_v5 = vsub.s32 1, %v2496_v41 }
  0x94   :  { %v45_v7 = vpop.xlane.xlu0 %44 }
  0x95   :  { %v48_v8 = vmul.f32 0.015625, %v45_v7  ;;  %v51_v9 = vmul.f32 %v49_v6, %v49_v6 }
  0x97   :  { %v50_v10 = vsub.f32 %v2453_v1, %v48_v8  ;;  %v53_v11 = vsel %vm39_vm0, %v51_v9, 0.0  ;;  %v97_v9 = vrot.slane %v2502_v43, %v96_v5 }
  0x98   :  { %54 = vadd.xlane.f32.xlu1 %v53_v11 }
  0x99   :  { %v52_v12 = vmul.f32 %v50_v10, %v50_v10 }
  0x9b   :  { %v56_v13 = vsel %vm39_vm0, %v52_v12, 0.0 }
  0x9c   :  { %57 = vadd.xlane.f32.xlu1 %v56_v13 }
 0x125   :  { %v55_v23 = vpop.xlane.xlu1 %54 }
 0x126   :  { %v59_v24 = vmul.f32 0.015625, %v55_v23 }
 0x128   :  { %v61_v25 = vadd.f32 1e-05, %v59_v24 }
 0x129   :  { %v58_v26 = vpop.xlane.xlu1 %57 }
 0x12a   :  { %2314 = vrsqrt.f32 %v61_v25  ;;  %v60_v27 = vmul.f32 0.015625, %v58_v26 }
 0x12c   :  { %v62_v28 = vadd.f32 1e-05, %v60_v27 }
 0x12e   :  { %2316 = vrsqrt.f32 %v62_v28 }
 0x134   :  { %v2315_v29 = vpop.eup %2314 }
 0x135   :  { %v65_v30 = vmul.f32 %v2315_v29, %v49_v6 }
 0x137   :  { %v71_v34 = vmul.f32 %v2021_v31, %v65_v30 }
 0x138   :  { %v2317_v32 = vpop.eup %2316 }
 0x139   :  { %v66_v33 = vmul.f32 %v2317_v32, %v50_v10  ;;  %v77_v37 = vadd.f32 %v2022_v35, %v71_v34 }
 0x13b   :  { %v72_v36 = vmul.f32 %v2021_v31, %v66_v33 }
 0x13d   :  { %v78_v38 = vadd.f32 %v2022_v35, %v72_v36 }
 0x13f   :  { %v79_v39 = vpack.c.bf16 %v78_v38, %v77_v37 }
 0x141   :  { %2031 = vmatmul.mubr.msk.bf16.vlgmr.msra.gmra.mrb[0].mxu0 %vm39_vm0, %v79_v39 }
 0x142   :  { %2176 = vmatprep.mubr.msk.f32.mxu0 %vm2388_vm1, %v2387_v44 }
 0x214   :  { %v177_v46 = vpop.f32.mrb[0].mxu0 }
 0x215   :  { %v178_v47 = vadd.f32 %v177_v46, %v93_v45  ;;  %v2513_v48 = vpop.f32.mrb[1].mxu0 }
 0x216   :  { %v181_v49 = vpop.f32.mrb[2].mxu0  ;;  %v2560_v14 = vadd.f32 %v2513_v48, %v97_v9 }
 0x217   :  { %v2515_v50 = vpop.f32.mrb[3].mxu0  ;;  %194 = vrot.lane.b32.xlu1 %v178_v47, %s2389_s3  ;;  %188 = vrot.lane.b32.xlu0 %v178_v47, %s2390_s29  ;;  %v182_v51 = vadd.f32 %v181_v49, %v93_v45  ;;  %v206_v58 = vmul.f32 0.25, %v178_v47 }
 0x218   :  { %v2563_v15 = vadd.f32 %v2515_v50, %v97_v9 }
 0x219   :  { %v207_v61 = vmul.f32 0.25, %v182_v51 }
 0x21b   :  { %190 = vrot.lane.b32.xlu1 %v182_v51, %s2390_s29  ;;  %200 = vrot.lane.b32.xlu0 %v178_v47, %s2391_s30 }
 0x21f   :  { %196 = vrot.lane.b32.xlu1 %v182_v51, %s2389_s3  ;;  %240 = vrot.lane.b32.xlu0 %v178_v47, %s2392_s0 }
 0x223   :  { %202 = vrot.lane.b32.xlu1 %v182_v51, %s2391_s30 }
 0x227   :  { %318 = vrot.lane.b32.xlu1 %v182_v51, %s2392_s0 }
 0x289   :  { %v195_v52 = vpop.permute.xlu1 %194  ;;  %v189_v53 = vpop.permute.xlu0 %188 }
 0x28a   :  { %395 = vrot.lane.b32.xlu0 %v189_v53, %s2392_s0  ;;  %v208_v63 = vmul.f32 0.25, %v189_v53  ;;  %v210_v7 = vmul.f32 0.25, %v195_v52 }
 0x28d   :  { %v191_v54 = vpop.permute.xlu1 %190  ;;  %v201_v55 = vpop.permute.xlu0 %200 }
 0x28e   :  { %472 = vrot.lane.b32.xlu1 %v191_v54, %s2392_s0  ;;  %549 = vrot.lane.b32.xlu0 %v195_v52, %s2392_s0  ;;  %v209_v3 = vmul.f32 0.25, %v191_v54  ;;  %v212_v12 = vmul.f32 0.25, %v201_v55 }
 0x291   :  { %v197_v56 = vpop.permute.xlu1 %196  ;;  %v241_v57 = vpop.permute.xlu0 %240 }
 0x292   :  { %626 = vrot.lane.b32.xlu1 %v197_v56, %s2392_s0  ;;  %703 = vrot.lane.b32.xlu0 %v201_v55, %s2392_s0  ;;  %v211_v8 = vmul.f32 0.25, %v197_v56 }
 0x293   :  { %2150 = vmatpush3.xpose.msk.msra.mxu1 %vm242_vm2, %v241_v57 }
 0x294   :  { %2154 = vmatprep.subr.mxu1 %v2387_v44 }
 0x295   :  { %v203_v59 = vpop.permute.xlu1 %202 }
 0x296   :  { %2152 = vmatmul.mubr.msk.f32.vlgmr.msra.gmra.mrb[0].mxu1 %vm242_vm2, %v206_v58  ;;  %780 = vrot.lane.b32.xlu1 %v203_v59, %s2392_s0  ;;  %v213_v13 = vmul.f32 0.25, %v203_v59 }
 0x297   :  { %2156 = vmatprep.mubr.msk.f32.mxu1 %vm2388_vm1, %v2387_v44 }
 0x299   :  { %v319_v60 = vpop.permute.xlu1 %318 }
 0x29a   :  { %2155 = vmatpush3.xpose.msk.msra.mxu1 %vm242_vm2, %v319_v60 }
 0x29b   :  { %2159 = vmatprep.subr.mxu1 %v2387_v44 }
 0x29d   :  { %2157 = vmatmul.mubr.msk.f32.vlgmr.msra.gmra.mrb[2].mxu1 %vm242_vm2, %v207_v61 }
 0x29e   :  { %2161 = vmatprep.mubr.msk.f32.mxu1 %vm2388_vm1, %v2387_v44 }
 0x2fc   :  { %v396_v62 = vpop.permute.xlu0 %395 }
 0x2fd   :  { %2160 = vmatpush3.xpose.msk.msra.mxu1 %vm242_vm2, %v396_v62 }
 0x2fe   :  { %2164 = vmatprep.subr.mxu1 %v2387_v44 }
 0x300   :  { %v473_v2 = vpop.permute.xlu1 %472  ;;  %2162 = vmatmul.mubr.msk.f32.vlgmr.msra.gmra.mrb[4].mxu1 %vm242_vm2, %v208_v63  ;;  %v550_v4 = vpop.permute.xlu0 %549 }
 0x301   :  { %2165 = vmatpush3.xpose.msk.msra.mxu1 %vm242_vm2, %v473_v2  ;;  %2166 = vmatprep.mubr.msk.f32.mxu1 %vm2388_vm1, %v2387_v44 }
 0x302   :  { %2169 = vmatprep.subr.mxu1 %v2387_v44 }
 0x304   :  { %v627_v6 = vpop.permute.xlu1 %626  ;;  %2167 = vmatmul.mubr.msk.f32.vlgmr.msra.gmra.mrb[6].mxu1 %vm242_vm2, %v209_v3  ;;  %v704_v10 = vpop.permute.xlu0 %703 }
 0x305   :  { %2170 = vmatpush3.xpose.msk.msra.mxu1 %vm242_vm2, %v550_v4  ;;  %2175 = vmatpush3.xpose.msk.msra.mxu0 %vm242_vm2, %v627_v6 }
 0x306   :  { %2171 = vmatprep.mubr.msk.f32.mxu1 %vm2388_vm1, %v2387_v44  ;;  %2184 = vmatprep.subr.mxu0 %v2387_v44 }
 0x307   :  { %2179 = vmatprep.subr.mxu1 %v2387_v44 }
 0x308   :  { %2177 = vmatmul.mubr.msk.f32.vlgmr.msra.gmra.mrb[4].mxu0 %vm242_vm2, %v211_v8  ;;  %v781_v11 = vpop.permute.xlu1 %780  ;;  %2172 = vmatmul.mubr.msk.f32.vlgmr.msra.gmra.mrb[8].mxu1 %vm242_vm2, %v210_v7 }
 0x309   :  { %2180 = vmatpush3.xpose.msk.msra.mxu1 %vm242_vm2, %v704_v10  ;;  %2185 = vmatpush3.xpose.msk.msra.mxu0 %vm242_vm2, %v781_v11 }
 0x30a   :  { %2181 = vmatprep.mubr.msk.f32.mxu1 %vm2388_vm1, %v2387_v44  ;;  %2186 = vmatprep.mubr.msk.f32.mxu0 %vm2388_vm1, %v2387_v44 }
 0x30b   :  { %2189 = vmatprep.subr.mxu1 %v2387_v44  ;;  %2194 = vmatprep.subr.mxu0 %v2387_v44 }
 0x30c   :  { %2182 = vmatmul.mubr.msk.f32.vlgmr.msra.gmra.mrb[10].mxu1 %vm242_vm2, %v212_v12  ;;  %2187 = vmatmul.mubr.msk.f32.vlgmr.msra.gmra.mrb[6].mxu0 %vm242_vm2, %v213_v13 }
 0x30d   :  { %2190 = vmatpush3.msra.mxu1 %v2560_v14  ;;  %2195 = vmatpush3.msra.mxu0 %v2563_v15 }
 0x30e   :  { %2191 = vmatprep.mubr.msk.f32.mxu1 %vm2388_vm1, %v2387_v44  ;;  %2199 = vmatprep.subr.mxu1 %v2387_v44 }
 0x30f   :  { %2196 = vmatprep.mubr.msk.f32.mxu0 %vm2388_vm1, %v2387_v44  ;;  %2204 = vmatprep.subr.mxu0 %v2387_v44 }
 0x369   :  { %v314_v19 = vpop.f32.mrb[0].mxu1 }
 0x36a   :  { %v315_v20 = vadd.f32 %v314_v19, %v239_v18  ;;  %v2153_v21 = vpop.f32.mrb[1].mxu1 }
 0x36c   :  { %v858_v23 = vsel %vm857_vm4, %v315_v20, -inf }
 0x36d   :  { %859 = vmax.xlane.f32.xlu0 %v858_v23 }
 0x370   :  { %v391_v24 = vpop.f32.mrb[2].mxu1 }
 0x371   :  { %v392_v25 = vadd.f32 %v391_v24, %v239_v18  ;;  %v2158_v26 = vpop.f32.mrb[3].mxu1 }
 0x373   :  { %v861_v27 = vsel %vm857_vm4, %v392_v25, -inf }
 0x374   :  { %862 = vmax.xlane.f32.xlu1 %v861_v27 }
 0x3d3   :  { %v468_v28 = vpop.f32.mrb[4].mxu1 }
 0x3d4   :  { %v469_v29 = vadd.f32 %v468_v28, %v239_v18  ;;  %v2163_v30 = vpop.f32.mrb[5].mxu1 }
 0x3d6   :  { %v864_v31 = vsel %vm857_vm4, %v469_v29, -inf }
 0x3d7   :  { %865 = vmax.xlane.f32.xlu0 %v864_v31  ;;  %v545_v32 = vpop.f32.mrb[6].mxu1 }
 0x3d8   :  { %v546_v33 = vadd.f32 %v545_v32, %v239_v18  ;;  %v2168_v34 = vpop.f32.mrb[7].mxu1 }
 0x3da   :  { %v867_v35 = vsel %vm857_vm4, %v546_v33, -inf }
 0x3db   :  { %v699_v36 = vpop.f32.mrb[4].mxu0  ;;  %868 = vmax.xlane.f32.xlu0 %v867_v35  ;;  %v622_v37 = vpop.f32.mrb[8].mxu1 }
 0x3dc   :  { %v700_v38 = vadd.f32 %v699_v36, %v239_v18  ;;  %v623_v39 = vadd.f32 %v622_v37, %v239_v18  ;;  %v2173_v40 = vpop.f32.mrb[9].mxu1  ;;  %v2178_v43 = vpop.f32.mrb[5].mxu0 }
 0x3de   :  { %v873_v45 = vsel %vm857_vm4, %v700_v38, -inf  ;;  %v870_v46 = vsel %vm857_vm4, %v623_v39, -inf }
 0x3df   :  { %v853_v47 = vpop.f32.mrb[6].mxu0  ;;  %874 = vmax.xlane.f32.xlu1 %v873_v45  ;;  %871 = vmax.xlane.f32.xlu0 %v870_v46  ;;  %v776_v48 = vpop.f32.mrb[10].mxu1 }
 0x3e0   :  { %v854_v49 = vadd.f32 %v853_v47, %v239_v18  ;;  %v777_v50 = vadd.f32 %v776_v48, %v239_v18  ;;  %v2183_v51 = vpop.f32.mrb[11].mxu1  ;;  %v2188_v52 = vpop.f32.mrb[7].mxu0 }
 0x3e2   :  { %v879_v53 = vsel %vm857_vm4, %v854_v49, -inf  ;;  %v876_v54 = vsel %vm857_vm4, %v777_v50, -inf }
 0x3e3   :  { %880 = vmax.xlane.f32.xlu1 %v879_v53  ;;  %877 = vmax.xlane.f32.xlu0 %v876_v54 }
 0x3f4   :  { %218 = vrot.lane.b32.xlu1 %v2563_v15, %s2390_s29 }
 0x3f8   :  { %222 = vrot.lane.b32.xlu1 %v2560_v14, %s2389_s3 }
 0x3f9   :  { %216 = vrot.lane.b32.xlu0 %v2560_v14, %s2390_s29 }
 0x3fa   :  { %v860_v55 = vpop.xlane.xlu0 %859 }
 0x3fb   :  { %v882_v56 = vsub.f32 %v315_v20, %v860_v55 }
 0x3fc   :  { %224 = vrot.lane.b32.xlu1 %v2563_v15, %s2389_s3 }
 0x3fd   :  { %v890_v57 = vmul.f32 1.442695, %v882_v56 }
 0x3ff   :  { %2318 = vpow2.f32 %v890_v57 }
 0x401   :  { %v863_v58 = vpop.xlane.xlu1 %862 }
 0x402   :  { %v883_v59 = vsub.f32 %v392_v25, %v863_v58 }
 0x404   :  { %v892_v60 = vmul.f32 1.442695, %v883_v59 }
 0x406   :  { %2320 = vpow2.f32 %v892_v60 }
 0x409   :  { %v2319_v61 = vpop.eup %2318 }
 0x40a   :  { %v906_v62 = vsel %vm857_vm4, %v2319_v61, 0.0 }
 0x410   :  { %v2321_v63 = vpop.eup %2320 }
 0x411   :  { %v909_v2 = vsel %vm857_vm4, %v2321_v63, 0.0 }
 0x418   :  { %907 = vadd.xlane.f32.xlu0 %v906_v62 }
 0x420   :  { %910 = vadd.xlane.f32.xlu1 %v909_v2 }
 0x464   :  { %v866_v3 = vpop.xlane.xlu0 %865 }
 0x465   :  { %v884_v4 = vsub.f32 %v469_v29, %v866_v3 }
 0x467   :  { %v894_v6 = vmul.f32 1.442695, %v884_v4 }
 0x468   :  { %v869_v7 = vpop.xlane.xlu0 %868 }
 0x469   :  { %2322 = vpow2.f32 %v894_v6  ;;  %v885_v8 = vsub.f32 %v546_v33, %v869_v7  ;;  %v2282_v7 = vld [vmem:[%s2787_s4] sm:$0xff]  }
 0x46b   :  { %v896_v13 = vmul.f32 1.442695, %v885_v8 }
 0x46c   :  { %v875_v9 = vpop.xlane.xlu1 %874  ;;  %v872_v10 = vpop.xlane.xlu0 %871 }
 0x46d   :  { %v887_v11 = vsub.f32 %v700_v38, %v875_v9  ;;  %v886_v12 = vsub.f32 %v623_v39, %v872_v10 }
 0x46f   :  { %v900_v16 = vmul.f32 1.442695, %v887_v11  ;;  %v898_v17 = vmul.f32 1.442695, %v886_v12 }
 0x470   :  { %v881_v18 = vpop.xlane.xlu1 %880  ;;  %v878_v19 = vpop.xlane.xlu0 %877 }
 0x471   :  { %2324 = vpow2.f32 %v900_v16  ;;  %v889_v20 = vsub.f32 %v854_v49, %v881_v18  ;;  %v888_v21 = vsub.f32 %v777_v50, %v878_v19  ;;  %v2283_v16 = vld [vmem:[%s2787_s4 + $0x8] sm:$0xff]  }
 0x472   :  { %2326 = vpow2.f32 %v898_v17  ;;  %v2284_v17 = vld [vmem:[%s2787_s4 + $0x10] sm:$0xff]  }
 0x473   :  { %v2323_v23 = vpop.eup %2322  ;;  %2328 = vpow2.f32 %v896_v13  ;;  %v904_v24 = vmul.f32 1.442695, %v889_v20  ;;  %v902_v25 = vmul.f32 1.442695, %v888_v21  ;;  %v2285_v21 = vld [vmem:[%s2787_s4 + $0x18] sm:$0xff]  }
 0x474   :  { %v912_v26 = vsel %vm857_vm4, %v2323_v23, 0.0  ;;  %v219_v37 = vpop.permute.xlu1 %218  ;;  %v217_v38 = vpop.permute.xlu0 %216 }
 0x475   :  { %913 = vadd.xlane.f32.xlu0 %v912_v26  ;;  %2330 = vpow2.f32 %v902_v25 }
 0x476   :  { %2332 = vpow2.f32 %v904_v24 }
 0x478   :  { %v223_v39 = vpop.permute.xlu1 %222 }
 0x47b   :  { %v2598_v27 = vpop.eup %2324 }
 0x47c   :  { %v2327_v28 = vpop.eup %2326  ;;  %v921_v29 = vsel %vm857_vm4, %v2598_v27, 0.0  ;;  %v225_v43 = vpop.permute.xlu1 %224 }
 0x47d   :  { %v2329_v30 = vpop.eup %2328  ;;  %922 = vadd.xlane.f32.xlu1 %v921_v29  ;;  %v918_v31 = vsel %vm857_vm4, %v2327_v28, 0.0 }
 0x47e   :  { %919 = vadd.xlane.f32.xlu0 %v918_v31  ;;  %v915_v33 = vsel %vm857_vm4, %v2329_v30, 0.0 }
 0x47f   :  { %v2331_v32 = vpop.eup %2330 }
 0x480   :  { %v2604_v34 = vpop.eup %2332  ;;  %v924_v35 = vsel %vm857_vm4, %v2331_v32, 0.0 }
 0x481   :  { %916 = vadd.xlane.f32.xlu1 %v915_v33  ;;  %v927_v36 = vsel %vm857_vm4, %v2604_v34, 0.0 }
 0x482   :  { %925 = vadd.xlane.f32.xlu0 %v924_v35 }
 0x485   :  { %928 = vadd.xlane.f32.xlu1 %v927_v36 }
 0x496   :  { %230 = vrot.lane.b32.xlu1 %v2563_v15, %s2391_s30 }
 0x498   :  { %228 = vrot.lane.b32.xlu0 %v2560_v14, %s2391_s30 }
 0x4a5   :  { %v908_v40 = vpop.xlane.xlu0 %907 }
 0x4a6   :  { %2334 = vrcp.f32 %v908_v40 }
 0x4ad   :  { %v911_v45 = vpop.xlane.xlu1 %910 }
 0x4ae   :  { %2336 = vrcp.f32 %v911_v45 }
 0x4b0   :  { %v2335_v46 = vpop.eup %2334 }
 0x4b1   :  { %v938_v47 = vmul.f32 %v2335_v46, %v2319_v61 }
 0x4b3   :  { %2192 = vmatmul.mubr.msk.f32.vlgmr.msra.gmra.mrb[12].mxu1 %vm857_vm4, %v938_v47 }
 0x4b4   :  { %2200 = vmatpush3.msra.mxu1 %v217_v38  ;;  %2201 = vmatprep.mubr.msk.f32.mxu1 %vm2388_vm1, %v2387_v44 }
 0x4b5   :  { %2209 = vmatprep.subr.mxu1 %v2387_v44 }
 0x4b8   :  { %v2337_v15 = vpop.eup %2336 }
 0x4b9   :  { %v939_v14 = vmul.f32 %v2337_v15, %v2321_v63 }
 0x4bb   :  { %2197 = vmatmul.mubr.msk.f32.vlgmr.msra.gmra.mrb[8].mxu0 %vm857_vm4, %v939_v14 }
 0x4bc   :  { %2205 = vmatpush3.msra.mxu0 %v219_v37  ;;  %2206 = vmatprep.mubr.msk.f32.mxu0 %vm2388_vm1, %v2387_v44 }
 0x4bd   :  { %2214 = vmatprep.subr.mxu0 %v2387_v44 }
 0x502   :  { %v914_v48 = vpop.xlane.xlu0 %913 }
 0x503   :  { %2338 = vrcp.f32 %v914_v48 }
 0x50a   :  { %v923_v49 = vpop.xlane.xlu1 %922 }
 0x50b   :  { %v920_v50 = vpop.xlane.xlu0 %919 }
 0x50c   :  { %2340 = vrcp.f32 %v920_v50 }
 0x50d   :  { %v2339_v51 = vpop.eup %2338 }
 0x50e   :  { %v940_v52 = vmul.f32 %v2339_v51, %v2323_v23  ;;  %v917_v53 = vpop.xlane.xlu1 %916 }
 0x50f   :  { %2342 = vrcp.f32 %v917_v53  ;;  %v926_v54 = vpop.xlane.xlu0 %925 }
 0x510   :  { %2344 = vrcp.f32 %v926_v54  ;;  %2202 = vmatmul.mubr.msk.f32.vlgmr.msra.gmra.mrb[14].mxu1 %vm857_vm4, %v940_v52 }
 0x511   :  { %2346 = vrcp.f32 %v923_v49  ;;  %2210 = vmatpush3.msra.mxu1 %v223_v39  ;;  %2211 = vmatprep.mubr.msk.f32.mxu1 %vm2388_vm1, %v2387_v44  ;;  %v2056_v49 = vld [vmem:[%s2784_s1 + $0x4] ss:$0 sm:$0xff] }
 0x512   :  { %v929_v55 = vpop.xlane.xlu1 %928  ;;  %2219 = vmatprep.subr.mxu1 %v2387_v44 }
 0x513   :  { %2348 = vrcp.f32 %v929_v55  ;;  %v229_v59 = vpop.permute.xlu0 %228 }
 0x516   :  { %v2341_v56 = vpop.eup %2340  ;;  %v231_v4 = vpop.permute.xlu1 %230 }
 0x517   :  { %v942_v57 = vmul.f32 %v2341_v56, %v2327_v28 }
 0x519   :  { %v2343_v58 = vpop.eup %2342  ;;  %2212 = vmatmul.mubr.msk.f32.vlgmr.msra.gmra.mrb[16].mxu1 %vm857_vm4, %v942_v57 }
 0x51a   :  { %v2345_v60 = vpop.eup %2344  ;;  %v941_v61 = vmul.f32 %v2343_v58, %v2329_v30  ;;  %2220 = vmatpush3.msra.mxu1 %v229_v59  ;;  %2221 = vmatprep.mubr.msk.f32.mxu1 %vm2388_vm1, %v2387_v44 }
 0x51b   :  { %v2347_v62 = vpop.eup %2346  ;;  %v944_v63 = vmul.f32 %v2345_v60, %v2331_v32 }
 0x51c   :  { %2207 = vmatmul.mubr.msk.f32.vlgmr.msra.gmra.mrb[10].mxu0 %vm857_vm4, %v941_v61  ;;  %v943_v2 = vmul.f32 %v2347_v62, %v2598_v27 }
 0x51d   :  { %2215 = vmatpush3.msra.mxu0 %v225_v43  ;;  %2222 = vmatmul.mubr.msk.f32.vlgmr.msra.gmra.mrb[18].mxu1 %vm857_vm4, %v944_v63  ;;  %v2349_v3 = vpop.eup %2348 }
 0x51e   :  { %2216 = vmatprep.mubr.msk.f32.mxu0 %vm2388_vm1, %v2387_v44  ;;  %2224 = vmatprep.subr.mxu0 %v2387_v44  ;;  %v945_v6 = vmul.f32 %v2349_v3, %v2604_v34 }
 0x520   :  { %2217 = vmatmul.mubr.msk.f32.vlgmr.msra.gmra.mrb[12].mxu0 %vm857_vm4, %v943_v2 }
 0x521   :  { %2225 = vmatpush3.msra.mxu0 %v231_v4  ;;  %2226 = vmatprep.mubr.msk.f32.mxu0 %vm2388_vm1, %v2387_v44 }
 0x522   :  { %2229 = vmatprep.subr.bf16.mxu0 %v2387_v44 }
 0x524   :  { %2227 = vmatmul.mubr.msk.f32.vlgmr.msra.gmra.mrb[14].mxu0 %vm857_vm4, %v945_v6  ;;  %v2288_v6 = vld [vmem:[%s2788_s5 + $0x4] ss:$8 sps:$4 sm:$0xff]  }
 0x525   :  { %2237 = vmatprep.mubr.msk.bf16.mxu0 %vm2388_vm1, %v2387_v44  ;;  %2230 = vmatpush3.bf16.msra.mxu0 %v2282_v7  ;;  %v2286_v7 = vld [vmem:[%s2788_s5] ss:$8 sps:$4 sm:$0xff]  }
 0x526   :  { %2231 = vmatprep.subr.bf16.mxu0 %v2387_v44 }
 0x529   :  { %2232 = vmatpush3.bf16.msra.mxu0 %v2283_v16 }
 0x52a   :  { %2233 = vmatprep.subr.bf16.mxu0 %v2387_v44 }
 0x52d   :  { %2234 = vmatpush3.bf16.msra.mxu0 %v2284_v17 }
 0x52e   :  { %2235 = vmatprep.subr.bf16.mxu0 %v2387_v44 }
 0x531   :  { %2236 = vmatpush3.bf16.msra.mxu0 %v2285_v21 }
 0x532   :  { %1747 = vmatprep.subr.bf16.mxu0 %v2288_v6 }
 0x586   :  { %v1015_v8 = vpop.f32.mrb[12].mxu1 }
 0x587   :  { %v2193_v9 = vpop.f32.mrb[13].mxu1 }
 0x588   :  { %v2289_v9 = vld [vmem:[%s2788_s5 + $0x10] ss:$8 sps:$4 sm:$0xff]  }
 0x58e   :  { %v1088_v10 = vpop.f32.mrb[8].mxu0 }
 0x58f   :  { %v2198_v11 = vpop.f32.mrb[9].mxu0 }
 0x590   :  { %v2292_v11 = vld [vmem:[%s2788_s5 + $0x20] ss:$8 sps:$4 sm:$0xff]  }
 0x5e3   :  { %v1161_v12 = vpop.f32.mrb[14].mxu1 }
 0x5e4   :  { %v2203_v13 = vpop.f32.mrb[15].mxu1 }
 0x5e5   :  { %v2295_v13 = vld [vmem:[%s2788_s5 + $0x30] ss:$8 sps:$4 sm:$0xff]  }
 0x5ec   :  { %v1307_v18 = vpop.f32.mrb[16].mxu1 }
 0x5ed   :  { %v2213_v19 = vpop.f32.mrb[17].mxu1 }
 0x5ef   :  { %v1234_v20 = vpop.f32.mrb[10].mxu0 }
 0x5f0   :  { %v2255_v23 = vpack.i.bf16 %v1234_v20, %v1161_v12  ;;  %v1453_v24 = vpop.f32.mrb[18].mxu1  ;;  %v2208_v25 = vpop.f32.mrb[11].mxu0  ;;  %v2297_v12 = vld [vmem:[%s2788_s5 + $0x34] ss:$8 sps:$4 sm:$0xff]  }
 0x5f1   :  { %v2223_v26 = vpop.f32.mrb[19].mxu1  ;;  %v2062_v25 = vld [vmem:[%s2784_s1 + $0x2] ss:$0 sm:$0xff] }
 0x5f2   :  { %2256 = vrot.lane.b32.xlu0 %v2255_v23, %s2394_s17 }
 0x5f3   :  { %v1380_v27 = vpop.f32.mrb[12].mxu0 }
 0x5f4   :  { %v2260_v28 = vpack.i.bf16 %v1380_v27, %v1307_v18  ;;  %v2218_v29 = vpop.f32.mrb[13].mxu0 }
 0x5f5   :  { %v2063_v29 = vld [vmem:[%s2784_s1 + $0x3] ss:$0 sm:$0xff] }
 0x5f6   :  { %2261 = vrot.lane.b32.xlu1 %v2260_v28, %s2395_s18 }
 0x5f7   :  { %v1526_v30 = vpop.f32.mrb[14].mxu0 }
 0x5f8   :  { %v2265_v31 = vpack.i.bf16 %v1526_v30, %v1453_v24  ;;  %v2228_v44 = vpop.f32.mrb[15].mxu0 }
 0x5fa   :  { %2266 = vrot.lane.b32.xlu0 %v2265_v31, %s2396_s19 }
 0x664   :  { %v2257_v32 = vpop.permute.xlu0 %2256 }
 0x665   :  { %v2259_v34 = vunpack.i.h.bf16 %v2257_v32  ;;  %v2258_v35 = vunpack.i.l.bf16 %v2257_v32 }
 0x667   :  { %v1555_v39 = vsel %vm242_vm2, %v1088_v10, %v2259_v34  ;;  %v1554_v40 = vsel %vm242_vm2, %v1015_v8, %v2258_v35  ;;  %v2291_v8 = vld [vmem:[%s2788_s5 + $0x14] ss:$8 sps:$4 sm:$0xff]   ;;  %v2294_v10 = vld [vmem:[%s2788_s5 + $0x24] ss:$8 sps:$4 sm:$0xff]  }
 0x668   :  { %v2262_v33 = vpop.permute.xlu1 %2261  ;;  %v2299_v34 = vld [vmem:[%s2790_s7] sm:$0xff]   ;;  %v2300_v35 = vld [vmem:[%s2790_s7 + $0x48] sm:$0xff]  }
 0x669   :  { %v2264_v36 = vunpack.i.h.bf16 %v2262_v33  ;;  %v2263_v37 = vunpack.i.l.bf16 %v2262_v33  ;;  %v2298_v33 = vld [vmem:[%s2790_s7 + $0x40] sm:$0xff]  }
 0x66a   :  { %2127 = vmatprep.subr.bf16.mxu1 %v2298_v33 }
 0x66b   :  { %v1558_v46 = vsel %vm1556_vm5, %v1555_v39, %v2264_v36  ;;  %v1557_v47 = vsel %vm1556_vm5, %v1554_v40, %v2263_v37  ;;  %2128 = vmatpush3.bf16.msra.mxu1 %v2299_v34  ;;  %v2301_v36 = vld [vmem:[%s2790_s7 + $0x8] sm:$0xff]   ;;  %v2302_v37 = vld [vmem:[%s2790_s7 + $0x50] sm:$0xff]   ;;  %v2304_v39 = vld [vmem:[%s2790_s7 + $0x58] sm:$0xff]  }
 0x66c   :  { %v2267_v38 = vpop.permute.xlu0 %2266  ;;  %2129 = vmatprep.subr.bf16.mxu1 %v2300_v35  ;;  %v2305_v40 = vld [vmem:[%s2790_s7 + $0x18] sm:$0xff]  }
 0x66d   :  { %v2269_v43 = vunpack.i.h.bf16 %v2267_v38  ;;  %v2268_v45 = vunpack.i.l.bf16 %v2267_v38  ;;  %v2303_v38 = vld [vmem:[%s2790_s7 + $0x10] sm:$0xff]  }
 0x66f   :  { %v1561_v15 = vsel %vm1559_vm6, %v1558_v46, %v2269_v43  ;;  %v1560_v14 = vsel %vm1559_vm6, %v1557_v47, %v2268_v45  ;;  %2130 = vmatpush3.bf16.msra.mxu1 %v2301_v36  ;;  %v2306_v43 = vld [vmem:[%s2790_s7 + $0x60] sm:$0xff]   ;;  %v2308_v46 = vld [vmem:[%s2790_s7 + $0x68] sm:$0xff]  }
 0x670   :  { %v1562_v48 = vpack.c.bf16 %v1561_v15, %v1560_v14  ;;  %2131 = vmatprep.subr.bf16.mxu1 %v2302_v37  ;;  %v2307_v45 = vld [vmem:[%s2790_s7 + $0x20] sm:$0xff]   ;;  %v2309_v47 = vld [vmem:[%s2790_s7 + $0x28] sm:$0xff]   ;;  %v2310_v15 = vld [vmem:[%s2790_s7 + $0x70] sm:$0xff]  }
 0x671   :  { %v2311_v14 = vld [vmem:[%s2790_s7 + $0x30] sm:$0xff]   ;;  %v2073_v37 = vld [vmem:[%s2784_s1 + $0x5] ss:$0 sm:$0xff] }
 0x672   :  { %2238 = vmatmul.mubr.msk.bf16.vlgmr.msra.gmra.mrb[16].mxu0 %vm39_vm0, %v1562_v48  ;;  %v2312_v48 = vld [vmem:[%s2790_s7 + $0x78] sm:$0xff]  }
 0x673   :  { %1779 = vmatprep.mubr.bf16.mxu0 %v2386_v22  ;;  %1748 = vmatpush1.bf16.msra.mxu0 %v2286_v7 }
 0x674   :  { %1749 = vmatprep.subr.bf16.mxu0 %v2291_v8  ;;  %2132 = vmatpush3.bf16.msra.mxu1 %v2303_v38 }
 0x675   :  { %2133 = vmatprep.subr.bf16.mxu1 %v2304_v39 }
 0x677   :  { %1750 = vmatpush1.bf16.msra.mxu0 %v2289_v9 }
 0x678   :  { %1751 = vmatprep.subr.bf16.mxu0 %v2294_v10  ;;  %2134 = vmatpush3.bf16.msra.mxu1 %v2305_v40 }
 0x679   :  { %2135 = vmatprep.subr.bf16.mxu1 %v2306_v43 }
 0x67b   :  { %1752 = vmatpush1.bf16.msra.mxu0 %v2292_v11 }
 0x67c   :  { %1753 = vmatprep.subr.bf16.mxu0 %v2297_v12  ;;  %2136 = vmatpush3.bf16.msra.mxu1 %v2307_v45 }
 0x67d   :  { %2137 = vmatprep.subr.bf16.mxu1 %v2308_v46 }
 0x67f   :  { %1754 = vmatpush1.bf16.msra.mxu0 %v2295_v13 }
 0x680   :  { %2138 = vmatpush3.bf16.msra.mxu1 %v2309_v47 }
 0x681   :  { %2139 = vmatprep.subr.bf16.mxu1 %v2310_v15 }
 0x684   :  { %2140 = vmatpush3.bf16.msra.mxu1 %v2311_v14 }
 0x685   :  { %2141 = vmatprep.subr.bf16.mxu1 %v2312_v48 }
 0x745   :  { %v1636_v50 = vpop.f32.mrb[16].mxu0 }
 0x746   :  { %v1637_v51 = vadd.f32 %v2056_v49, %v1636_v50  ;;  %v2239_v52 = vpop.f32.mrb[17].mxu0  ;;  %v1692_v50 = vld [vmem:[%s2789_s6] sm:$0x3] }
 0x747   :  { %v1639_v53 = vpop.f32.mrb[18].mxu0  ;;  %v1701_v52 = vrot.slane %v1692_v50, %v96_v5 }
 0x748   :  { %v2665_v54 = vadd.f32 %v1637_v51, %v2448_v0  ;;  %v1640_v55 = vadd.f32 %v2056_v49, %v1639_v53  ;;  %v2240_v56 = vpop.f32.mrb[19].mxu0  ;;  %v2313_v49 = vld [vmem:[%s2790_s7 + $0x38] sm:$0xff]   ;;  %v1697_v51 = vrot.slane %v1692_v50, %v92_v42 }
 0x749   :  { %2142 = vmatpush3.bf16.msra.mxu1 %v2313_v49 }
 0x74a   :  { %v2668_v57 = vadd.f32 %v1640_v55, %v2453_v1  ;;  %v1645_v58 = vsel %vm39_vm0, %v2665_v54, 0.0 }
 0x74b   :  { %1646 = vadd.xlane.f32.xlu1 %v1645_v58 }
 0x74c   :  { %v1648_v22 = vsel %vm39_vm0, %v2668_v57, 0.0 }
 0x74d   :  { %1649 = vadd.xlane.f32.xlu0 %v1648_v22 }
 0x7d8   :  { %v1647_v59 = vpop.xlane.xlu1 %1646 }
 0x7d9   :  { %v1651_v60 = vmul.f32 0.015625, %v1647_v59 }
 0x7da   :  { %v1650_v61 = vpop.xlane.xlu0 %1649 }
 0x7db   :  { %v1653_v62 = vsub.f32 %v2665_v54, %v1651_v60  ;;  %v1652_v0 = vmul.f32 0.015625, %v1650_v61 }
 0x7dd   :  { %v1654_v63 = vsub.f32 %v2668_v57, %v1652_v0  ;;  %v1655_v2 = vmul.f32 %v1653_v62, %v1653_v62 }
 0x7df   :  { %v1657_v1 = vsel %vm39_vm0, %v1655_v2, 0.0  ;;  %v1656_v3 = vmul.f32 %v1654_v63, %v1654_v63 }
 0x7e0   :  { %1658 = vadd.xlane.f32.xlu0 %v1657_v1 }
 0x7e1   :  { %v1660_v4 = vsel %vm39_vm0, %v1656_v3, 0.0 }
 0x7e4   :  { %1661 = vadd.xlane.f32.xlu0 %v1660_v4 }
 0x86d   :  { %v1659_v16 = vpop.xlane.xlu0 %1658 }
 0x86e   :  { %v1663_v17 = vmul.f32 0.015625, %v1659_v16 }
 0x870   :  { %v1665_v18 = vadd.f32 1e-05, %v1663_v17 }
 0x871   :  { %v1662_v19 = vpop.xlane.xlu0 %1661 }
 0x872   :  { %2350 = vrsqrt.f32 %v1665_v18  ;;  %v1664_v20 = vmul.f32 0.015625, %v1662_v19 }
 0x874   :  { %v1666_v21 = vadd.f32 1e-05, %v1664_v20 }
 0x876   :  { %2352 = vrsqrt.f32 %v1666_v21 }
 0x87c   :  { %v2351_v23 = vpop.eup %2350 }
 0x87d   :  { %v1669_v24 = vmul.f32 %v2351_v23, %v1653_v62 }
 0x87f   :  { %v1675_v27 = vmul.f32 %v2062_v25, %v1669_v24 }
 0x880   :  { %v2353_v26 = vpop.eup %2352 }
 0x881   :  { %v1670_v28 = vmul.f32 %v2353_v26, %v1654_v63  ;;  %v1681_v31 = vadd.f32 %v2063_v29, %v1675_v27 }
 0x883   :  { %v1676_v30 = vmul.f32 %v2062_v25, %v1670_v28 }
 0x885   :  { %v1682_v44 = vadd.f32 %v2063_v29, %v1676_v30 }
 0x887   :  { %v1683_v32 = vpack.c.bf16 %v1682_v44, %v1681_v31 }
 0x889   :  { %2072 = vmatmul.mubr.msk.bf16.vlgmr.msra.gmra.mrb[20].mxu0 %vm39_vm0, %v1683_v32 }
 0x95c   :  { %v1781_v53 = vpop.f32.mrb[20].mxu0 }
 0x95d   :  { %v1782_v55 = vadd.f32 %v1781_v53, %v1697_v51  ;;  %v1783_v56 = vpop.f32.mrb[21].mxu0 }
 0x95e   :  { %v1784_v58 = vadd.f32 %v1783_v56, %v1701_v52  ;;  %v1785_v22 = vpop.f32.mrb[22].mxu0 }
 0x95f   :  { %v1794_v59 = vmul.f32 0.044715, %v1782_v55  ;;  %v1786_v60 = vadd.f32 %v1785_v22, %v1697_v51  ;;  %v1787_v61 = vpop.f32.mrb[23].mxu0  ;;  %v1790_v25 = vmul.f32 0.5, %v1782_v55 }
 0x960   :  { %v1795_v62 = vmul.f32 0.044715, %v1784_v58  ;;  %v1788_v0 = vadd.f32 %v1787_v61, %v1701_v52  ;;  %v1791_v28 = vmul.f32 0.5, %v1784_v58 }
 0x961   :  { %v1798_v63 = vmul.f32 %v1794_v59, %v1782_v55  ;;  %v1796_v2 = vmul.f32 0.044715, %v1786_v60  ;;  %v1792_v26 = vmul.f32 0.5, %v1786_v60 }
 0x962   :  { %v1799_v1 = vmul.f32 %v1795_v62, %v1784_v58  ;;  %v1797_v3 = vmul.f32 0.044715, %v1788_v0  ;;  %v1793_v29 = vmul.f32 0.5, %v1788_v0 }
 0x963   :  { %v1802_v4 = vmul.f32 %v1798_v63, %v1782_v55  ;;  %v1800_v6 = vmul.f32 %v1796_v2, %v1786_v60 }
 0x964   :  { %v1803_v42 = vmul.f32 %v1799_v1, %v1784_v58  ;;  %v1801_v7 = vmul.f32 %v1797_v3, %v1788_v0 }
 0x965   :  { %v1806_v41 = vadd.f32 %v1802_v4, %v1782_v55  ;;  %v1804_v5 = vmul.f32 %v1800_v6, %v1786_v60 }
 0x966   :  { %v1805_v8 = vmul.f32 %v1801_v7, %v1788_v0  ;;  %v1807_v9 = vadd.f32 %v1803_v42, %v1784_v58 }
 0x967   :  { %v1810_v10 = vmul.f32 0.7978846, %v1806_v41  ;;  %v1808_v11 = vadd.f32 %v1804_v5, %v1786_v60 }
 0x968   :  { %v1809_v12 = vadd.f32 %v1805_v8, %v1788_v0  ;;  %v1811_v13 = vmul.f32 0.7978846, %v1807_v9 }
 0x969   :  { %2354 = vtanh.f32 %v1810_v10  ;;  %v1812_v16 = vmul.f32 0.7978846, %v1808_v11 }
 0x96a   :  { %v1813_v17 = vmul.f32 0.7978846, %v1809_v12  ;;  %2356 = vtanh.f32 %v1811_v13 }
 0x96b   :  { %2358 = vtanh.f32 %v1812_v16 }
 0x96c   :  { %2360 = vtanh.f32 %v1813_v17 }
 0x973   :  { %v2355_v18 = vpop.eup %2354 }
 0x974   :  { %v2357_v19 = vpop.eup %2356  ;;  %v1818_v20 = vadd.f32 1.0, %v2355_v18 }
 0x975   :  { %v2359_v21 = vpop.eup %2358  ;;  %v1819_v23 = vadd.f32 1.0, %v2357_v19 }
 0x976   :  { %v2361_v24 = vpop.eup %2360  ;;  %v1820_v27 = vadd.f32 1.0, %v2359_v21  ;;  %v1822_v31 = vmul.f32 %v1818_v20, %v1790_v25 }
 0x977   :  { %v1821_v30 = vadd.f32 1.0, %v2361_v24  ;;  %v1823_v32 = vmul.f32 %v1819_v23, %v1791_v28 }
 0x978   :  { %v1824_v44 = vmul.f32 %v1820_v27, %v1792_v26 }
 0x979   :  { %v1825_v33 = vmul.f32 %v1821_v30, %v1793_v29 }
 0x97a   :  { %v1826_v34 = vpack.c.bf16 %v1824_v44, %v1822_v31 }
 0x97b   :  { %v1827_v35 = vpack.c.bf16 %v1825_v33, %v1823_v32 }
 0x97d   :  { %1992 = vmatprep.mubr.bf16.mxu1 %v1827_v35 }
 0x97e   :  { %1993 = vmatmul.mubr.bf16.vlgmr.msra.gmra.mrb[20].mxu1 %v1826_v34 }
 0xa51   :  { %v2143_v36 = vpop.f32.mrb[20].mxu1 }
 0xa52   :  { %v2144_v38 = vpop.f32.mrb[21].mxu1 }
 0xa53   :  { %v2145_v39 = vadd.f32 %v2144_v38, %v2143_v36  ;;  %v2146_v40 = vpop.f32.mrb[22].mxu1 }
 0xa54   :  { %v2147_v43 = vpop.f32.mrb[23].mxu1 }
 0xa55   :  { %v1995_v45 = vadd.f32 %v2145_v39, %v2073_v37  ;;  %v2148_v46 = vadd.f32 %v2147_v43, %v2146_v40 }
 0xa57   :  { %v2001_v47 = vadd.f32 %v1995_v45, %v2665_v54  ;;  %v1998_v15 = vadd.f32 %v2148_v46, %v2073_v37 }
 0xa59   :  { %2003 = vst.msk [vmem:[#allocation2] sm:$0xff] %vm39_vm0, %v2001_v47  ;;  %v2002_v14 = vadd.f32 %v1998_v15, %v2668_v57 }
 0xa5b   :  { %2004 = vst.msk [vmem:[#allocation2 + $0x8] sm:$0xff] %vm39_vm0, %v2002_v14 }
 0xa5c   :  { %2373 = shalt.err (!%p2370_p4)
}
 0xa5d   :  { %s2374_s25 = scalar_lea.hbm %s2791_s8, 256 }
 0xa5e   :  { %p2375_p5 = scmp.ne.s32.totalorder %s2791_s8, %s2374_s25  ;;  %p2378_p6 = scmp.lt.u32.totalorder %s2374_s25, %s2791_s8 }
 0xa60   :  { %p2380_p7 = pnand %p2378_p6, %p2375_p5 }
 0xa62   :  { %2383 = shalt.err (!%p2380_p7)
}
 0xa63   :  { %s2398_s3 = smov 128   ;;  %s2399_s29 = smov 8  }
 0xa64   :  { %2016 = dma.vmem_to_hbm [thread:$0]  %s2011_s22, 256, %s2791_s8, [#allocation3], %s2398_s3, %s2398_s3, %s2399_s29  }
 0xa65   :  { %2384 = dma.done.wait [#allocation3], 256  }
 0xa66   :  { %2385 = vsyncadd [#allocation3], 4294967040 }
 0xa67   :  { %2020 = vsyncpa [#allocation3], 1 }

</bundles_post_ra>
